<compile_context>
chip_gen: v6e
topology: v6e:2x2x1
jax: 0.10.0
libtpu: 0.0.40
codegen_flags: <defaults>
</compile_context>

<pallas_src>
import jax
import jax.numpy as jnp
from jax.experimental import pallas as pl
from jax.experimental.pallas import tpu as pltpu


def _linear_lane_dense_kernel(w_ref, b_ref, x_ref, o_ref):
    """y_t[n, :] = sum_k w[n, k] * x_t[k, :] + b[n]   (batch on the lane axis).

    w_ref: (num_classes * in_features,) f32, SMEM (row-major: w[n,k] at n*K + k)
    b_ref: (num_classes,)               f32, SMEM
    x_ref: (in_features, TILE_B)        native dtype, VMEM
    o_ref: (num_classes, TILE_B)        VMEM
    """
    in_features = x_ref.shape[0]
    num_classes = o_ref.shape[0]

    x = x_ref[...].astype(jnp.float32)  # cast in VMEM; free on the VPU

    # Static unroll: num_classes chains of in_features scalar-splat FMAs.
    # (in_features is 2 for this module; keep the VPU formulation rather than an
    #  MXU dot -- with num_classes=2 the MXU would run at <2% column utilization.)
    for n in range(num_classes):
        acc = x[0:1, :] * w_ref[n * in_features + 0] + b_ref[n]
        for k in range(1, in_features):
            acc = acc + x[k:k + 1, :] * w_ref[n * in_features + k]
        o_ref[n:n + 1, :] = acc.astype(o_ref.dtype)


def simple_linear_model(x, weight, bias, *, tile_b=2048):
    """Forward pass of SimpleLinearModel: y = x @ weight.T + bias.

    x:      (batch, in_features)
    weight: (num_classes, in_features)   (PyTorch nn.Linear convention)
    bias:   (num_classes,)
    """
    batch, in_features = x.shape
    num_classes = weight.shape[0]
    out_dtype = x.dtype

    # Parameters -> flat 1-D f32 scalars for SMEM (1-D avoids SMEM 2-D padding;
    # a (2,2) 2-D SMEM block would pad to an (8,128)-word tile).
    w_flat = jnp.asarray(weight, jnp.float32).reshape(num_classes * in_features)
    b_flat = jnp.asarray(bias, jnp.float32).reshape(num_classes)

    # Feature-major / lane-dense layout: batch along the 128-lane axis.
    x_t = jnp.asarray(x).T  # (in_features, batch), native dtype (no upcast pass)

    if batch <= tile_b:
        # Single grid step, full-array blocks: no (8,128) constraint (block ==
        # full dims), no padding, no per-step overhead amortization issue.
        tile = batch
        padded = batch
    else:
        # Tile the lane axis; tile_b must be a multiple of 128.
        tile = tile_b
        padded = pl.cdiv(batch, tile) * tile
        if padded != batch:
            # TODO(synk): replace this pad (+ slice below) with an in-kernel
            # masked-store epilogue for the ragged last tile to avoid the extra
            # HBM passes on a purely bandwidth-bound op.
            x_t = jnp.pad(x_t, ((0, 0), (0, padded - batch)))

    grid = (padded // tile,)

    y_t = pl.pallas_call(
        _linear_lane_dense_kernel,
        out_shape=jax.ShapeDtypeStruct((num_classes, padded), out_dtype),
        grid=grid,
        in_specs=[
            pl.BlockSpec(memory_space=pltpu.MemorySpace.SMEM),    # w_flat (scalars)
            pl.BlockSpec(memory_space=pltpu.MemorySpace.SMEM),    # b_flat (scalars)
            pl.BlockSpec((in_features, tile), lambda i: (0, i)),  # x_t lane tile
        ],
        out_specs=pl.BlockSpec((num_classes, tile), lambda i: (0, i)),
        compiler_params=pltpu.CompilerParams(
            dimension_semantics=("parallel",),  # shards lane tiles across v7x's 2 TCs
        ),
    )(w_flat, b_flat, x_t)

    if padded != batch:
        y_t = y_t[:, :batch]

    # Back to the module's (batch, num_classes) contract; the transposes are
    # layout plumbing on tiny (batch x 2) slabs, cheaper than 2/128-lane masked
    # loads/stores inside the kernel.
    return y_t.T


if __name__ == "__main__":
    in_features = 2
    num_classes = 2
    batch = 32  # <= tile_b -> single grid step, full-array blocks, no padding

    key = jax.random.PRNGKey(0)
    k_x, k_w, k_b = jax.random.split(key, 3)

    # Deterministic parameter init mimicking nn.Linear: U(-1/sqrt(in), 1/sqrt(in))
    bound = 1.0 / (in_features ** 0.5)
    weight = jax.random.uniform(k_w, (num_classes, in_features), jnp.float32,
                                minval=-bound, maxval=bound)
    bias = jax.random.uniform(k_b, (num_classes,), jnp.float32,
                              minval=-bound, maxval=bound)
    x = jax.random.normal(k_x, (batch, in_features), jnp.float32)

    out = simple_linear_model(x, weight, bias)
    out = jax.block_until_ready(out)

    # Reference check against plain JAX
    ref = x @ weight.T + bias
    assert out.shape == (batch, num_classes)
    assert jnp.allclose(out, ref, atol=1e-5, rtol=1e-5)

    print("KERNEL_OK")
</pallas_src>

<mosaic_0001>
module attributes {stable_mosaic.version = 11 : i64} {
  func.func @_linear_lane_dense_kernel(%arg0: i32, %arg1: memref<4xf32, #tpu.memory_space<smem>>, %arg2: memref<2xf32, #tpu.memory_space<smem>>, %arg3: memref<2x32xf32, #tpu.memory_space<vmem>>, %arg4: memref<2x32xf32, #tpu.memory_space<vmem>>) attributes {dimension_semantics = [#tpu.dimension_semantics<parallel>], iteration_bounds = array<i64: 1>, scalar_prefetch = 0 : i64, scratch_operands = 0 : i64, tpu.core_type = #tpu.core_type<tc>, window_params = [{transform_indices = @transform_0, window_bounds = array<i64: 4>}, {transform_indices = @transform_1, window_bounds = array<i64: 2>}, {transform_indices = @transform_2, window_bounds = array<i64: 2, 32>}, {transform_indices = @transform_3, window_bounds = array<i64: 2, 32>}]} {
    %c0 = arith.constant 0 : index
    %c0_0 = arith.constant 0 : index
    %0 = vector.load %arg3[%c0, %c0_0] : memref<2x32xf32, #tpu.memory_space<vmem>>, vector<2x32xf32>
    %1 = vector.extract_strided_slice %0 {offsets = [0, 0], sizes = [1, 32], strides = [1, 1]} : vector<2x32xf32> to vector<1x32xf32>
    %c0_1 = arith.constant 0 : index
    %2 = memref.load %arg1[%c0_1] : memref<4xf32, #tpu.memory_space<smem>>
    %3 = vector.broadcast %2 : f32 to vector<1x32xf32>
    %4 = arith.mulf %1, %3 : vector<1x32xf32>
    %c0_2 = arith.constant 0 : index
    %5 = memref.load %arg2[%c0_2] : memref<2xf32, #tpu.memory_space<smem>>
    %6 = vector.broadcast %5 : f32 to vector<1x32xf32>
    %7 = arith.addf %4, %6 : vector<1x32xf32>
    %8 = vector.extract_strided_slice %0 {offsets = [1, 0], sizes = [1, 32], strides = [1, 1]} : vector<2x32xf32> to vector<1x32xf32>
    %c1 = arith.constant 1 : index
    %9 = memref.load %arg1[%c1] : memref<4xf32, #tpu.memory_space<smem>>
    %10 = vector.broadcast %9 : f32 to vector<1x32xf32>
    %11 = arith.mulf %8, %10 : vector<1x32xf32>
    %12 = arith.addf %7, %11 : vector<1x32xf32>
    %c0_3 = arith.constant 0 : index
    %c0_4 = arith.constant 0 : index
    %13 = vector.load %arg4[%c0_3, %c0_4] : memref<2x32xf32, #tpu.memory_space<vmem>>, vector<1x32xf32>
    tpu.vector_store %arg4[%c0_3, %c0_4], %12 {strides = array<i32>} : memref<2x32xf32, #tpu.memory_space<vmem>>, vector<1x32xf32>,
    %14 = vector.extract_strided_slice %0 {offsets = [0, 0], sizes = [1, 32], strides = [1, 1]} : vector<2x32xf32> to vector<1x32xf32>
    %c2 = arith.constant 2 : index
    %15 = memref.load %arg1[%c2] : memref<4xf32, #tpu.memory_space<smem>>
    %16 = vector.broadcast %15 : f32 to vector<1x32xf32>
    %17 = arith.mulf %14, %16 : vector<1x32xf32>
    %c1_5 = arith.constant 1 : index
    %18 = memref.load %arg2[%c1_5] : memref<2xf32, #tpu.memory_space<smem>>
    %19 = vector.broadcast %18 : f32 to vector<1x32xf32>
    %20 = arith.addf %17, %19 : vector<1x32xf32>
    %21 = vector.extract_strided_slice %0 {offsets = [1, 0], sizes = [1, 32], strides = [1, 1]} : vector<2x32xf32> to vector<1x32xf32>
    %c3 = arith.constant 3 : index
    %22 = memref.load %arg1[%c3] : memref<4xf32, #tpu.memory_space<smem>>
    %23 = vector.broadcast %22 : f32 to vector<1x32xf32>
    %24 = arith.mulf %21, %23 : vector<1x32xf32>
    %25 = arith.addf %20, %24 : vector<1x32xf32>
    %c1_6 = arith.constant 1 : index
    %c0_7 = arith.constant 0 : index
    %26 = vector.load %arg4[%c1_6, %c0_7] : memref<2x32xf32, #tpu.memory_space<vmem>>, vector<1x32xf32>
    tpu.vector_store %arg4[%c1_6, %c0_7], %25 {strides = array<i32>} : memref<2x32xf32, #tpu.memory_space<vmem>>, vector<1x32xf32>,
    return
  }
  func.func @transform_0(%arg0: i32) -> i32 {
    %c0_i32 = arith.constant 0 : i32
    %c0_i32_0 = arith.constant 0 : i32
    return %c0_i32 : i32
  }
  func.func @transform_1(%arg0: i32) -> i32 {
    %c0_i32 = arith.constant 0 : i32
    %c0_i32_0 = arith.constant 0 : i32
    return %c0_i32 : i32
  }
  func.func @transform_2(%arg0: i32) -> (i32, i32) {
    %c0_i32 = arith.constant 0 : i32
    %c0_i32_0 = arith.constant 0 : i32
    return %c0_i32, %arg0 : i32, i32
  }
  func.func @transform_3(%arg0: i32) -> (i32, i32) {
    %c0_i32 = arith.constant 0 : i32
    %c0_i32_0 = arith.constant 0 : i32
    return %c0_i32, %arg0 : i32, i32
  }
}

</mosaic_0001>

<bundles_post_ra>
// kernel: tpu_custom_call.1
= control target key start
LH: loop header
LB: loop body
LE: loop exit
PB: predicated region body
PF: predicated region fallthrough
CT: control target
= control target key end

     0   :  { %8 = vsyncpa [#allocation4], 0  ;;  %s172_s0 = inlined_call_operand.hbm [shape: f32[4], index: 0, kind: input, shape index: {}]   ;;  %s173_s1 = inlined_call_operand.vmem [shape: f32[2], index: 1, kind: input, shape index: {}]   ;;  %s174_s2 = inlined_call_operand.vmem [shape: f32[2,32], index: 2, kind: input, shape index: {}]   ;;  %s175_s3 = inlined_call_operand.hbm [shape: f32[2,32], index: 3, kind: output, shape index: {}]  }
   0x1   :  { %9 = vsyncpa [#allocation5], 0 }
   0x2   :  { %10 = vsyncpa [#allocation3], 0  ;;  %s25_s14 = sshll.u32 %s173_s1, 4  ;;  %s137_s15 = smov [#allocation2]   ;;  %s26_s14 = int_to_ptr.vmem [resolvable:$true] %s25_s14 }
   0x3   :  { %18 = dma.hbm_to_smem %s172_s0, 16, %s137_s15, [#allocation4]  }
   0x4   :  { %s99_s18 = scalar_lea.vmem %s26_s14, 16  ;;  %p104_p1 = scmp.lt.s32.totalorder %s26_s14, %s26_s14 }
   0x5   :  { %p100_p0 = scmp.ne.s32.totalorder %s26_s14, %s99_s18  ;;  %p105_p2 = scmp.lt.s32.totalorder %s99_s18, %s99_s18 }
   0x7   :  { %p106_p3 = por %p105_p2, %p104_p1 }
   0x9   :  { %p107_p4 = pnand %p106_p3, %p100_p0 }
   0xb   :  { %110 = shalt.err (!%p107_p4)
}
   0xc   :  { %s138_s19 = smov [#allocation6]  }
   0xd   :  { %28 = dma.vmem_to_smem %s26_s14, 16, %s138_s19, [#allocation5]  }
   0xe   :  { %131 = dma.done.wait [#allocation4], 16  }
   0xf   :  { %132 = vsyncadd [#allocation4], 4294967280 }
  0x10   :  { %133 = dma.done.wait [#allocation5], 16  }
  0x11   :  { %134 = vsyncadd [#allocation5], 4294967280 }
  0x12   :  { %37 = sfence }
  0x13   :  { %s39_s1 = sld [smem:[#allocation2]]  ;;  %v38_v0 = vld [vmem:[%s174_s2] sm:$0x3]  ;;  %vm52_vm0 = vcmask 253952   ;;  %s139_s26 = smov [#allocation7]  }
  0x14   :  { %s42_s20 = sld [smem:[#allocation6]]  ;;  %s74_s27 = sshll.u32 %s139_s26, 4  ;;  %s75_s27 = int_to_ptr.vmem [resolvable:$true] %s74_s27 }
  0x15   :  { %s84_s21 = sld [smem:[#allocation2 + $0x1]]  ;;  %s111_s2 = scalar_lea.vmem %s75_s27, 32 }
  0x16   :  { %s85_s22 = sld [smem:[#allocation2 + $0x2]]  ;;  %p112_p5 = scmp.ne.s32.totalorder %s75_s27, %s111_s2 }
  0x17   :  { %s86_s24 = sld [smem:[#allocation6 + $0x1]]  ;;  %p116_p6 = scmp.lt.s32.totalorder %s75_s27, %s75_s27 }
  0x18   :  { %s87_s25 = sld [smem:[#allocation2 + $0x3]]  ;;  %p117_p7 = scmp.lt.s32.totalorder %s111_s2, %s111_s2 }
  0x19   :  { %v40_v1 = vstv %s39_s1 }
  0x1a   :  { %v41_v2 = vmul.f32 %v40_v1, %v38_v0  ;;  %v43_v3 = vstv %s42_s20  ;;  %p118_p8 = por %p117_p7, %p116_p6 }
  0x1b   :  { %v46_v4 = vstv %s84_s21 }
  0x1c   :  { %v44_v5 = vadd.f32 %v43_v3, %v41_v2  ;;  %v47_v6 = vmul.f32 %v46_v4, %v38_v0  ;;  %v55_v7 = vstv %s85_s22  ;;  %p119_p9 = pnand %p118_p8, %p112_p5 }
  0x1d   :  { %v56_v8 = vmul.f32 %v55_v7, %v38_v0  ;;  %v58_v9 = vstv %s86_s24 }
  0x1e   :  { %v49_v10 = vrot.slane %v47_v6, 1  ;;  %v61_v11 = vstv %s87_s25 }
  0x1f   :  { %v59_v12 = vadd.f32 %v58_v9, %v56_v8  ;;  %v62_v13 = vmul.f32 %v61_v11, %v38_v0 }
  0x20   :  { %v51_v14 = vadd.f32 %v49_v10, %v44_v5 }
  0x21   :  { %v64_v15 = vrot.slane %v62_v13, 1 }
  0x22   :  { %53 = vst.msk [vmem:[#allocation7] sm:$0x1] %vm52_vm0, %v51_v14 }
  0x23   :  { %v66_v16 = vadd.f32 %v64_v15, %v59_v12 }
  0x25   :  { %67 = vst.msk [vmem:[#allocation7 + $0x1] sm:$0x1] %vm52_vm0, %v66_v16 }
  0x26   :  { %122 = shalt.err (!%p119_p9)
}
  0x27   :  { %77 = dma.vmem_to_hbm [thread:$0]  %s75_s27, 32, %s175_s3, [#allocation3]  }
  0x28   :  { %135 = dma.done.wait [#allocation3], 32  }
  0x29   :  { %136 = vsyncadd [#allocation3], 4294967264 }
  0x2a   :  { %81 = vsyncpa [#allocation3], 1 }
  0x2b   :  { %82 = vsyncpa [#allocation4], 1 }
  0x2c   :  { %83 = vsyncpa [#allocation5], 1 }

</bundles_post_ra>
